<compile_context>
chip_gen: v5e
topology: v5e:2x2
jax: 0.10.0
libtpu: 0.0.40
codegen_flags: <defaults>
</compile_context>

<pallas_src>
import math

import jax
import jax.numpy as jnp
from jax.experimental import pallas as pl
from jax.experimental.pallas import tpu as pltpu

B, C, H, W = 2, 4, 16, 16
HW = H * W                 # 256 (lane-dense last dim)
HID = 32                   # hidden width of synthetic denoiser MLP
T_STEPS = 1000             # num_training_steps
MIN_SNR_GAMMA = 5.0
BC = B * C                 # 8  -> full vreg sublane height for elementwise path
BHID = B * HID             # 64
KEXT = 2 * BC              # 16 -> extended contraction dim (xt rows + bias row + pad)


def ddpm_loss_kernel(data_ref, w1_ref, w2_ref, out_ref):
    """Whole batch in one program (no grid).

    data_ref : VMEM (32, HW) f32   rows  0.. 7: x_0   (batch folded into sublanes)
                                   rows  8..15: noise
                                   rows 16..23: K-extension block (row 16 = ones, rest 0)
                                   rows 24..31: per-row coefs in lanes 0..2:
                                                [sqrt(abar), sqrt(1-abar), lw/(B*(mask_sum+1e-8))]
    w1_ref   : VMEM (BHID, KEXT) bf16  block-diag layer-1 weight, col 8 = folded time emb
    w2_ref   : VMEM (BC, BHID)  bf16   block-diag layer-2 weight
    out_ref  : VMEM (1, 128) f32       final scalar loss broadcast across lanes
    """
    x0 = data_ref[0:BC, :]                      # (8, 256)
    nz = data_ref[BC:2 * BC, :]                 # (8, 256)
    kext = data_ref[2 * BC:3 * BC, :]           # (8, 256) row 0 = ones
    coef = data_ref[3 * BC:4 * BC, :]           # (8, 256) lanes 0..2 used

    a = coef[:, 0:1]                            # (8, 1)  sqrt(alpha_bar_t)
    s = coef[:, 1:2]                            # (8, 1)  sqrt(1 - alpha_bar_t)
    ws = coef[:, 2:3]                           # (8, 1)  min-SNR weight / (B*(mask_sum+1e-8))

    # q_sample (f32, matching @autocast(enabled=False)):
    #   x_t = sqrt(abar) * x_0 + sqrt(1 - abar) * eps
    # forward(mask=None) -> ones mask, so the blend xt*mask + (1-mask)*x_0 is identity.
    xt = a * x0 + s * nz                        # (8, 256) f32

    # K-extended activation: rows 0..7 = xt, row 8 = ones (bias/time-emb lane),
    # rows 9..15 = zeros.  Both halves are 8-sublane tiles -> concat is free.
    xt_ext = jnp.concatenate([xt, kext], axis=0)          # (16, 256)

    # synthetic denoiser: per-pixel MLP with additive time embedding + SiLU,
    # batch-folded via block-diagonal weights -> one bf16 MXU dot per layer,
    # f32 accumulation; time embedding rides in column 8 of w1.
    h = jnp.dot(w1_ref[...], xt_ext.astype(jnp.bfloat16),
                preferred_element_type=jnp.float32)        # (64, 256) f32
    h = h * jax.nn.sigmoid(h)                              # SiLU in f32 (EUP)
    pred = jnp.dot(w2_ref[...], h.astype(jnp.bfloat16),
                   preferred_element_type=jnp.float32)     # (8, 256) f32

    # objective='eps' -> target = noise ; criterion='l2' (reduction='none').
    # per-sample mask normalization, min-SNR weighting and the batch mean are
    # pre-folded into the per-row scale ws, so the final loss is one reduction.
    sq = (pred - nz) ** 2
    total = jnp.sum(sq * ws)
    out_ref[...] = jnp.full((1, 128), total, dtype=jnp.float32)


def _pallas_loss(data, w1_ext, w2bd):
    out = pl.pallas_call(
        ddpm_loss_kernel,
        out_shape=jax.ShapeDtypeStruct((1, 128), jnp.float32),
        in_specs=[pl.BlockSpec(memory_space=pltpu.MemorySpace.VMEM)] * 3,
        out_specs=pl.BlockSpec(memory_space=pltpu.MemorySpace.VMEM),
        cost_estimate=pl.CostEstimate(
            flops=2 * BHID * KEXT * HW + 2 * BC * BHID * HW + 8 * BC * HW,
            transcendentals=BHID * HW,
            bytes_accessed=32 * HW * 4 + BHID * KEXT * 2 + BC * BHID * 2 + 128 * 4,
        ),
    )(data, w1_ext, w2bd)
    return out[0, 0]


def _block_diag(w, b):
    m, n = w.shape
    out = jnp.zeros((b * m, b * n), dtype=w.dtype)
    for i in range(b):
        out = out.at[i * m:(i + 1) * m, i * n:(i + 1) * n].set(w)
    return out


def diffusion_forward_loss(x0_nchw, noise_nchw, steps, w1t, w2t,
                           alphas_cumprod, loss_weight_table, mask=None):
    """forward(x_0, mask=None) -> scalar training loss (DDPM / eps / l2 / min-SNR)."""
    if mask is not None:
        # TODO(synk): general-mask variant (mask blend + per-sample mask-sum
        # normalization) not implemented; forward() default path is mask=None and
        # the pre-folded ws row below assumes an all-ones mask.
        raise NotImplementedError("masked p_loss path not implemented")

    # batch fold: (B, C, H, W) -> (B*C, HW), spatial axis lane-dense.
    x0f = x0_nchw.reshape(BC, HW).astype(jnp.float32)
    nzf = noise_nchw.reshape(BC, HW).astype(jnp.float32)

    abar = alphas_cumprod[steps]                   # (B,)
    sqrt_abar = jnp.sqrt(abar)
    sqrt_om = jnp.sqrt(1.0 - abar)
    lw = loss_weight_table[steps]                  # min-SNR weight (eps objective)

    # per-row coefficients; all-ones mask sum (= C*H*W) + 1e-8 and the batch mean
    # are folded into the loss-weight lane.  Packed into lanes 0..2 of 8 slab rows.
    wrow = lw / (B * (C * HW + 1e-8))
    coef_cols = jnp.stack([
        jnp.repeat(sqrt_abar, C),
        jnp.repeat(sqrt_om, C),
        jnp.repeat(wrow, C),
    ], axis=1).astype(jnp.float32)                                     # (BC, 3)
    coef_rows = jnp.zeros((BC, HW), jnp.float32).at[:, :3].set(coef_cols)

    # K-extension block: row 0 = ones (multiplies the folded time-emb column of w1).
    ones_blk = jnp.zeros((BC, HW), jnp.float32).at[0, :].set(1.0)

    # single lane-dense input slab -> one DMA instead of four.
    data = jnp.concatenate([x0f, nzf, ones_blk, coef_rows], axis=0)    # (32, 256)

    # get_denoiser_condition(): discrete steps -> sinusoidal time embedding (glue)
    half = HID // 2
    freqs = jnp.exp(-math.log(10000.0) *
                    jnp.arange(half, dtype=jnp.float32) / (half - 1))
    ang = steps.astype(jnp.float32)[:, None] * freqs[None, :]
    temb = jnp.concatenate([jnp.sin(ang), jnp.cos(ang)], axis=-1)      # (B, HID)

    # batch-folded block-diagonal denoiser weights; time embedding folded into
    # column BC of the K-extended layer-1 weight (columns BC+1.. are zero pad).
    w1bd = _block_diag(w1t, B).astype(jnp.float32)                     # (BHID, BC)
    w1_ext = jnp.zeros((BHID, KEXT), jnp.float32)
    w1_ext = w1_ext.at[:, :BC].set(w1bd)
    w1_ext = w1_ext.at[:, BC].set(temb.reshape(BHID))
    w2bd = _block_diag(w2t, B).astype(jnp.float32)                     # (BC, BHID)

    return _pallas_loss(data,
                        w1_ext.astype(jnp.bfloat16),
                        w2bd.astype(jnp.bfloat16))


def reference_loss(x0_nchw, noise_nchw, steps, w1t, w2t,
                   alphas_cumprod, loss_weight_table):
    """Pure-JAX f32 reference of the original p_loss math (mask=None)."""
    x0 = x0_nchw.reshape(B, C, HW).astype(jnp.float32)
    nz = noise_nchw.reshape(B, C, HW).astype(jnp.float32)
    mask = jnp.ones_like(x0)
    abar = alphas_cumprod[steps]
    a = jnp.sqrt(abar)[:, None, None]
    s = jnp.sqrt(1.0 - abar)[:, None, None]
    lw = loss_weight_table[steps]
    xt = a * x0 + s * nz
    xt = xt * mask + (1.0 - mask) * x0
    half = HID // 2
    freqs = jnp.exp(-math.log(10000.0) *
                    jnp.arange(half, dtype=jnp.float32) / (half - 1))
    ang = steps.astype(jnp.float32)[:, None] * freqs[None, :]
    temb = jnp.concatenate([jnp.sin(ang), jnp.cos(ang)], axis=-1)[:, :, None]
    h = jnp.einsum('hc,bcw->bhw', w1t, xt, precision='highest') + temb
    h = h * jax.nn.sigmoid(h)
    pred = jnp.einsum('ch,bhw->bcw', w2t, h, precision='highest')
    loss = (pred - nz) ** 2
    lsum = jnp.sum(loss * mask, axis=(1, 2))
    msum = jnp.sum(mask, axis=(1, 2))
    return jnp.mean(lsum / (msum + 1e-8) * lw)


# TODO(synk): p_sample / sample / DDIM path are abstract (NotImplementedError) in the
# base class and are not part of forward(); they are not implemented here.

if __name__ == "__main__":
    key = jax.random.PRNGKey(0)
    k_x, k_noise, k_steps, k_w1, k_w2 = jax.random.split(key, 5)

    # inputs (NCHW like PyTorch)
    x0 = jax.random.normal(k_x, (B, C, H, W), dtype=jnp.float32)
    # randn_like(x_0) and sample_timesteps() are drawn here (outside the kernel)
    # for determinism, matching what forward() does internally.
    noise = jax.random.normal(k_noise, (B, C, H, W), dtype=jnp.float32)
    steps = jax.random.randint(k_steps, (B,), 0, T_STEPS)

    # setup_parameters(): linear beta schedule
    scale = 1000.0 / T_STEPS
    betas = jnp.linspace(scale * 1e-4, scale * 2e-2, T_STEPS, dtype=jnp.float32)
    alphas_cumprod = jnp.cumprod(1.0 - betas)

    # get_loss_weight(): min-SNR weighting for eps objective = min(snr, gamma)/snr
    snr = alphas_cumprod / (1.0 - alphas_cumprod)
    loss_weight_table = jnp.minimum(snr, MIN_SNR_GAMMA) / snr

    # deterministic synthetic denoiser weights (per-pixel MLP, C -> HID -> C)
    w1t = jax.random.normal(k_w1, (HID, C), dtype=jnp.float32) * 0.1
    w2t = jax.random.normal(k_w2, (C, HID), dtype=jnp.float32) * 0.1

    loss = jax.jit(diffusion_forward_loss)(
        x0, noise, steps, w1t, w2t, alphas_cumprod, loss_weight_table)
    loss = jax.block_until_ready(loss)

    ref = jax.block_until_ready(
        reference_loss(x0, noise, steps, w1t, w2t, alphas_cumprod, loss_weight_table))

    assert jnp.isfinite(loss)
    # bf16 MXU inputs (f32 accumulation) vs. the f32 'highest' reference: the scalar
    # loss agrees to well under 1%; tolerance set accordingly.
    assert jnp.allclose(loss, ref, rtol=1e-2, atol=1e-5), (loss, ref)
    print("KERNEL_OK")
</pallas_src>

<mosaic_0001>
module attributes {stable_mosaic.version = 11 : i64} {
  func.func @ddpm_loss_kernel(%arg0: memref<32x256xf32, #tpu.memory_space<vmem>>, %arg1: memref<64x16xbf16, #tpu.memory_space<vmem>>, %arg2: memref<8x64xbf16, #tpu.memory_space<vmem>>, %arg3: memref<1x128xf32, #tpu.memory_space<vmem>>) attributes {dimension_semantics = [], scalar_prefetch = 0 : i64, scratch_operands = 0 : i64, tpu.core_type = #tpu.core_type<tc>} {
    %c0 = arith.constant 0 : index
    %c0_0 = arith.constant 0 : index
    %0 = vector.load %arg0[%c0, %c0_0] : memref<32x256xf32, #tpu.memory_space<vmem>>, vector<8x256xf32>
    %c8 = arith.constant 8 : index
    %c0_1 = arith.constant 0 : index
    %1 = vector.load %arg0[%c8, %c0_1] : memref<32x256xf32, #tpu.memory_space<vmem>>, vector<8x256xf32>
    %c16 = arith.constant 16 : index
    %c0_2 = arith.constant 0 : index
    %2 = vector.load %arg0[%c16, %c0_2] : memref<32x256xf32, #tpu.memory_space<vmem>>, vector<8x256xf32>
    %c24 = arith.constant 24 : index
    %c0_3 = arith.constant 0 : index
    %3 = vector.load %arg0[%c24, %c0_3] : memref<32x256xf32, #tpu.memory_space<vmem>>, vector<8x256xf32>
    %4 = vector.extract_strided_slice %3 {offsets = [0, 0], sizes = [8, 1], strides = [1, 1]} : vector<8x256xf32> to vector<8x1xf32>
    %5 = vector.extract_strided_slice %3 {offsets = [0, 1], sizes = [8, 1], strides = [1, 1]} : vector<8x256xf32> to vector<8x1xf32>
    %6 = vector.extract_strided_slice %3 {offsets = [0, 2], sizes = [8, 1], strides = [1, 1]} : vector<8x256xf32> to vector<8x1xf32>
    %7 = vector.broadcast %4 : vector<8x1xf32> to vector<8x256xf32>
    %8 = arith.mulf %7, %0 : vector<8x256xf32>
    %9 = vector.broadcast %5 : vector<8x1xf32> to vector<8x256xf32>
    %10 = arith.mulf %9, %1 : vector<8x256xf32>
    %11 = arith.addf %8, %10 : vector<8x256xf32>
    %12 = tpu.concatenate %11, %2 in 0 : vector<8x256xf32>, vector<8x256xf32> -> vector<16x256xf32>
    %c0_4 = arith.constant 0 : index
    %c0_5 = arith.constant 0 : index
    %13 = vector.load %arg1[%c0_4, %c0_5] : memref<64x16xbf16, #tpu.memory_space<vmem>>, vector<64x16xbf16>
    %14 = arith.truncf %12 : vector<16x256xf32> to vector<16x256xbf16>
    %cst = arith.constant dense<0.000000e+00> : vector<64x256xf32>
    %15 = tpu.matmul %13, %14, %cst {dimension_numbers = #tpu.dot_dimension_numbers<[1], [0], [0], [1], [0, 0, 1, 1], [], []>} : vector<64x16xbf16>, vector<16x256xbf16>, vector<64x256xf32> -> vector<64x256xf32>
    %16 = arith.negf %15 : vector<64x256xf32>
    %17 = math.exp %16 : vector<64x256xf32>
    %cst_6 = arith.constant 1.000000e+00 : f32
    %18 = vector.broadcast %cst_6 : f32 to vector<64x256xf32>
    %19 = arith.addf %18, %17 : vector<64x256xf32>
    %20 = arith.divf %18, %19 : vector<64x256xf32>
    %21 = arith.mulf %15, %20 : vector<64x256xf32>
    %c0_7 = arith.constant 0 : index
    %c0_8 = arith.constant 0 : index
    %22 = vector.load %arg2[%c0_7, %c0_8] : memref<8x64xbf16, #tpu.memory_space<vmem>>, vector<8x64xbf16>
    %23 = arith.truncf %21 : vector<64x256xf32> to vector<64x256xbf16>
    %cst_9 = arith.constant dense<0.000000e+00> : vector<8x256xf32>
    %24 = tpu.matmul %22, %23, %cst_9 {dimension_numbers = #tpu.dot_dimension_numbers<[1], [0], [0], [1], [0, 0, 1, 1], [], []>} : vector<8x64xbf16>, vector<64x256xbf16>, vector<8x256xf32> -> vector<8x256xf32>
    %25 = arith.subf %24, %1 : vector<8x256xf32>
    %26 = arith.mulf %25, %25 : vector<8x256xf32>
    %27 = vector.broadcast %6 : vector<8x1xf32> to vector<8x256xf32>
    %28 = arith.mulf %26, %27 : vector<8x256xf32>
    %29 = vector.shape_cast %28 : vector<8x256xf32> to vector<1x8x256xf32>
    %cst_10 = arith.constant dense<0.000000e+00> : vector<1xf32>
    %30 = vector.multi_reduction <add>, %29, %cst_10 [1, 2] : vector<1x8x256xf32> to vector<1xf32>
    %31 = vector.shape_cast %30 : vector<1xf32> to vector<1x1x1xf32>
    %32 = vector.extract %31[0, 0, 0] : f32 from vector<1x1x1xf32>
    %33 = vector.broadcast %32 : f32 to vector<1x128xf32>
    %c0_11 = arith.constant 0 : index
    %c0_12 = arith.constant 0 : index
    %34 = vector.load %arg3[%c0_11, %c0_12] : memref<1x128xf32, #tpu.memory_space<vmem>>, vector<1x128xf32>
    tpu.vector_store %arg3[%c0_11, %c0_12], %33 {strides = array<i32>} : memref<1x128xf32, #tpu.memory_space<vmem>>, vector<1x128xf32>,
    return
  }
}

</mosaic_0001>

<bundles_post_ra>
// kernel: diffusion_forward_loss.1
= control target key start
LH: loop header
LB: loop body
LE: loop exit
PB: predicated region body
PF: predicated region fallthrough
CT: control target
= control target key end

     0   :  { %s1208_s0 = inlined_call_operand.vmem [shape: f32[32,256], index: 0, kind: input, shape index: {}]   ;;  %s1209_s1 = inlined_call_operand.vmem [shape: bf16[64,16], index: 1, kind: input, shape index: {}]   ;;  %s1210_s2 = inlined_call_operand.vmem [shape: bf16[8,64], index: 2, kind: input, shape index: {}]   ;;  %s1211_s3 = inlined_call_operand.hbm [shape: f32[1,128], index: 3, kind: output, shape index: {}]  }
   0x1   :  { %v711_v0 = vld [vmem:[%s1208_s0 + $0x30] sm:$0xff] }
   0x2   :  { %8 = vsyncpa [#allocation3], 0  ;;  %v684_v1 = vmov 0   ;;  %v685_v2 = vmov 1   ;;  %v16_v4 = vld [vmem:[%s1208_s0] sm:$0xff]  ;;  %v17_v5 = vld [vmem:[%s1208_s0 + $0x8] sm:$0xff] }
   0x3   :  { %590 = vset.pattern.permute.xlu0 %v684_v1  ;;  %v724_v6 = vld [vmem:[%s1208_s0 + $0x10] sm:$0xff]  ;;  %v729_v7 = vld [vmem:[%s1208_s0 + $0x18] sm:$0xff]  ;;  %v20_v13 = vld [vmem:[%s1208_s0 + $0x20] sm:$0xff]  ;;  %vm68_vm0 = vcmask 130048   ;;  %s527_s8 = sshll.u32 %s1211_s3, 4  ;;  %s687_s9 = smov [#allocation2]   ;;  %s528_s8 = int_to_ptr.hbm [resolvable:$true] %s527_s8 }
   0x4   :  { %25 = vperm.xlu0 %590, %v711_v0   ;;  %v21_v14 = vld [vmem:[%s1208_s0 + $0x28] sm:$0xff]  ;;  %v578_v19 = vld [vmem:[%s1209_s1] sm:$0xff]  ;;  %v581_v20 = vld [vmem:[%s1209_s1 + $0x18] sm:$0xff]  ;;  %s525_s10 = sshll.u32 %s687_s9, 4  ;;  %s526_s10 = int_to_ptr.vmem [resolvable:$true] %s525_s10 }
   0x5   :  { %v579_v21 = vld [vmem:[%s1209_s1 + $0x8] sm:$0xff]  ;;  %v580_v22 = vld [vmem:[%s1209_s1 + $0x10] sm:$0xff] }
   0xc   :  { %591 = vset.pattern.permute.xlu0 %v685_v2 }
   0xd   :  { %31 = vperm.xlu0 %591, %v711_v0  }
  0x76   :  { %v26_v3 = vpop.permute.xlu0 %25 }
  0x77   :  { %v28_v9 = vmul.f32 %v26_v3, %v16_v4  ;;  %v29_v10 = vmul.f32 %v26_v3, %v17_v5 }
  0x7f   :  { %v32_v8 = vpop.permute.xlu0 %31 }
  0x80   :  { %v34_v11 = vmul.f32 %v32_v8, %v724_v6  ;;  %v35_v12 = vmul.f32 %v32_v8, %v729_v7 }
  0x82   :  { %v36_v15 = vadd.f32 %v34_v11, %v28_v9  ;;  %v37_v16 = vadd.f32 %v35_v12, %v29_v10 }
  0x84   :  { %v46_v17 = vpack.c.bf16 %v20_v13, %v36_v15  ;;  %v47_v18 = vpack.c.bf16 %v21_v14, %v37_v16 }
  0x86   :  { %88 = vmatpush.bf16.msra.mxu0 %v46_v17  ;;  %582 = vmatpush.bf16.msra.mxu2 %v46_v17 }
  0x87   :  { %117 = vmatpush.bf16.msra.mxu1 %v47_v18  ;;  %583 = vmatpush.bf16.msra.mxu3 %v47_v18 }
  0x89   :  { %552 = vmatmul.msk.bf16.vlgmr.msra.gmra.mxu0 %vm68_vm0, %v578_v19  ;;  %555 = vmatmul.msk.bf16.vlgmr.msra.gmra.mxu2 %vm68_vm0, %v581_v20 }
  0x8a   :  { %556 = vmatmul.msk.bf16.vlgmr.msra.gmra.mxu1 %vm68_vm0, %v578_v19  ;;  %559 = vmatmul.msk.bf16.vlgmr.msra.gmra.mxu3 %vm68_vm0, %v581_v20 }
  0x99   :  { %553 = vmatmul.msk.bf16.gmra.mxu0 %vm68_vm0, %v579_v21 }
  0x9a   :  { %557 = vmatmul.msk.bf16.gmra.mxu1 %vm68_vm0, %v579_v21 }
  0xa9   :  { %554 = vmatmul.msk.bf16.gmra.mxu0 %vm68_vm0, %v580_v22 }
  0xaa   :  { %558 = vmatmul.msk.bf16.gmra.mxu1 %vm68_vm0, %v580_v22 }
 0x106   :  { %v751_v23 = vpop.f32.mrf.mxu0 }
 0x107   :  { %v560_v24 = vmul.f32 -1.442695, %v751_v23  ;;  %v754_v25 = vpop.f32.mrf.mxu1 }
 0x108   :  { %v561_v26 = vmul.f32 -1.442695, %v754_v25 }
 0x109   :  { %594 = vpow2.f32 %v560_v24 }
 0x10a   :  { %596 = vpow2.f32 %v561_v26 }
 0x10c   :  { %v757_v27 = vpop.f32.mrf.mxu2 }
 0x10d   :  { %v572_v28 = vmul.f32 -1.442695, %v757_v27  ;;  %v767_v35 = vpop.f32.mrf.mxu3 }
 0x10e   :  { %v760_v29 = vpop.f32.mrf.mxu0  ;;  %v573_v38 = vmul.f32 -1.442695, %v767_v35 }
 0x10f   :  { %v595_v30 = vpop.eup %594  ;;  %v562_v31 = vmul.f32 -1.442695, %v760_v29  ;;  %v763_v32 = vpop.f32.mrf.mxu1  ;;  %598 = vpow2.f32 %v572_v28 }
 0x110   :  { %v597_v33 = vpop.eup %596  ;;  %v765_v34 = vadd.f32 1.0, %v595_v30  ;;  %v563_v36 = vmul.f32 -1.442695, %v763_v32 }
 0x111   :  { %v770_v37 = vadd.f32 1.0, %v597_v33  ;;  %600 = vpow2.f32 %v562_v31 }
 0x112   :  { %602 = vrcp.f32 %v765_v34  ;;  %v212_v59 = vand.u32 2147483647, %v765_v34  ;;  %v214_v60 = vand.u32 2147483648, %v765_v34  ;;  %vm208_vm1 = vweird.f32 %v765_v34 }
 0x113   :  { %604 = vrcp.f32 %v770_v37  ;;  %v227_v62 = vand.u32 2147483647, %v770_v37  ;;  %v229_v2 = vand.u32 2147483648, %v770_v37  ;;  %vm223_vm3 = vweird.f32 %v770_v37 }
 0x114   :  { %606 = vpow2.f32 %v563_v36  ;;  %v775_v39 = vpop.f32.mrf.mxu2  ;;  %vm813_vm2 = vcmp.eq.f32.partialorder %v212_v59, 8.507059e+37  ;;  %v215_v8 = vor.u32 1.1754944e-38, %v214_v60 }
 0x115   :  { %v599_v40 = vpop.eup %598  ;;  %608 = vpow2.f32 %v573_v38  ;;  %v574_v44 = vmul.f32 -1.442695, %v775_v39  ;;  %v790_v50 = vpop.f32.mrf.mxu3  ;;  %vm823_vm5 = vcmp.eq.f32.partialorder %v227_v62, 8.507059e+37  ;;  %v230_v17 = vor.u32 1.1754944e-38, %v229_v2 }
 0x116   :  { %v777_v41 = vpop.f32.mrf.mxu0  ;;  %v788_v49 = vadd.f32 1.0, %v599_v40  ;;  %v575_v57 = vmul.f32 -1.442695, %v790_v50 }
 0x117   :  { %v601_v42 = vpop.eup %600  ;;  %v792_v51 = vpop.f32.mrf.mxu1  ;;  %610 = vpow2.f32 %v574_v44  ;;  %v564_v21 = vmul.f32 -1.442695, %v777_v41 }
 0x118   :  { %v779_v43 = vpop.eup %602  ;;  %v794_v52 = vadd.f32 1.0, %v601_v42  ;;  %v565_v22 = vmul.f32 -1.442695, %v792_v51  ;;  %v392_v26 = vand.u32 2147483647, %v788_v49 }
 0x119   :  { %v782_v45 = vpop.eup %604  ;;  %v204_v46 = vmul.f32 %v779_v43, %v765_v34  ;;  %vm209_vm4 = vweird.f32 %v779_v43 }
 0x11a   :  { %v607_v47 = vpop.eup %606  ;;  %v219_v48 = vmul.f32 %v782_v45, %v770_v37  ;;  %612 = vrcp.f32 %v794_v52  ;;  %v242_v9 = vand.u32 2147483647, %v794_v52  ;;  %vm224_vm6 = vweird.f32 %v782_v45  ;;  %vm842_vm7 = vmor %vm208_vm1, %vm209_vm4 }
 0x11b   :  { %v205_v53 = vsub.f32 1.0, %v204_v46  ;;  %v796_v54 = vadd.f32 1.0, %v607_v47  ;;  %v609_v55 = vpop.eup %608  ;;  %614 = vrcp.f32 %v788_v49  ;;  %vm238_vm8 = vweird.f32 %v794_v52  ;;  %vm863_vm10 = vmor %vm223_vm3, %vm224_vm6 }
 0x11c   :  { %v220_v56 = vsub.f32 1.0, %v219_v48  ;;  %v808_v63 = vadd.f32 1.0, %v609_v55  ;;  %vm849_vm9 = vcmp.eq.f32.partialorder %v242_v9, 8.507059e+37  ;;  %v244_v31 = vand.u32 2147483648, %v794_v52 }
 0x11d   :  { %616 = vrcp.f32 %v796_v54  ;;  %v206_v61 = vmul.f32 %v779_v43, %v205_v53  ;;  %v611_v3 = vpop.eup %610  ;;  %v257_v44 = vand.u32 2147483647, %v796_v54  ;;  %v259_v46 = vand.u32 2147483648, %v796_v54 }
 0x11e   :  { %v801_v58 = vpop.f32.mrf.mxu0  ;;  %v221_v1 = vmul.f32 %v782_v45, %v220_v56  ;;  %618 = vpow2.f32 %v575_v57  ;;  %v833_v18 = vadd.f32 1.0, %v611_v3  ;;  %v245_v53 = vor.u32 1.1754944e-38, %v244_v31 }
 0x11f   :  { %v207_v11 = vadd.f32 %v779_v43, %v206_v61  ;;  %620 = vrcp.f32 %v808_v63  ;;  %v829_v14 = vpop.f32.mrf.mxu1  ;;  %vm253_vm14 = vweird.f32 %v796_v54  ;;  %vm258_vm0 = vcmp.eq.f32.partialorder %v257_v44, 8.507059e+37 }
 0x120   :  { %v613_v4 = vpop.eup %612  ;;  %v222_v16 = vadd.f32 %v782_v45, %v221_v1  ;;  %622 = vrcp.f32 %v833_v18  ;;  %vm388_vm1 = vweird.f32 %v788_v49  ;;  %v407_v30 = vand.u32 2147483647, %v808_v63 }
 0x121   :  { %v819_v10 = vpop.eup %614  ;;  %v234_v13 = vmul.f32 %v613_v4, %v794_v52  ;;  %v211_v34 = vsel %vm842_vm7, %v779_v43, %v207_v11  ;;  %vm239_vm11 = vweird.f32 %v613_v4  ;;  %624 = vpow2.f32 %v564_v21 }
 0x122   :  { %v384_v28 = vmul.f32 %v819_v10, %v788_v49  ;;  %v226_v42 = vsel %vm863_vm10, %v782_v45, %v222_v16  ;;  %vm240_vm13 = vmor %vm238_vm8, %vm239_vm11  ;;  %v566_v45 = vmul.f32 -1.442695, %v801_v58  ;;  %v216_v55 = vsel %vm813_vm2, %v215_v8, %v211_v34 }
 0x123   :  { %v617_v15 = vpop.eup %616  ;;  %v235_v19 = vsub.f32 1.0, %v234_v13  ;;  %v231_v59 = vsel %vm823_vm5, %v230_v17, %v226_v42  ;;  %v567_v8 = vmul.f32 -1.442695, %v829_v14  ;;  %vm389_vm2 = vweird.f32 %v819_v10 }
 0x124   :  { %v249_v20 = vmul.f32 %v617_v15, %v796_v54  ;;  %v619_v24 = vpop.eup %618  ;;  %vm254_vm12 = vweird.f32 %v617_v15  ;;  %v260_v54 = vor.u32 1.1754944e-38, %v259_v46  ;;  %v385_v61 = vsub.f32 1.0, %v384_v28  ;;  %vm936_vm3 = vmor %vm388_vm1, %vm389_vm2 }
 0x125   :  { %v236_v38 = vmul.f32 %v613_v4, %v235_v19  ;;  %v873_v43 = vpop.eup %620  ;;  %v875_v48 = vadd.f32 1.0, %v619_v24  ;;  %vm255_vm15 = vmor %vm253_vm14, %vm254_vm12  ;;  %v902_v9 = vmul.f32 %v231_v59, %v754_v25  ;;  %v394_v28 = vand.u32 2147483648, %v788_v49 }
 0x126   :  { %v854_v33 = vpop.f32.mrf.mxu0  ;;  %v250_v40 = vsub.f32 1.0, %v249_v20  ;;  %v399_v52 = vmul.f32 %v873_v43, %v808_v63  ;;  %v895_v3 = vpop.eup %622  ;;  %v386_v17 = vmul.f32 %v819_v10, %v385_v61  ;;  %v409_v42 = vand.u32 2147483648, %v808_v63 }
 0x127   :  { %v237_v37 = vadd.f32 %v613_v4, %v236_v38  ;;  %626 = vrcp.f32 %v875_v48  ;;  %v893_v2 = vpop.f32.mrf.mxu1  ;;  %v625_v12 = vpop.eup %624  ;;  %v414_v25 = vmul.f32 %v895_v3, %v833_v18  ;;  %vm942_vm4 = vcmp.eq.f32.partialorder %v392_v26, 8.507059e+37 }
 0x128   :  { %v251_v47 = vmul.f32 %v617_v15, %v250_v40  ;;  %628 = vpow2.f32 %v566_v45  ;;  %v569_v13 = vmul.f32 -1.442695, %v893_v2  ;;  %v400_v19 = vsub.f32 1.0, %v399_v52 }
 0x129   :  { %v241_v56 = vsel %vm240_vm13, %v613_v4, %v237_v37  ;;  %v898_v4 = vmul.f32 %v216_v55, %v751_v23  ;;  %630 = vpow2.f32 %v565_v22  ;;  %v920_v20 = vadd.f32 1.0, %v625_v12 }
 0x12a   :  { %v252_v57 = vadd.f32 %v617_v15, %v251_v47  ;;  %v246_v60 = vsel %vm849_vm9, %v245_v53, %v241_v56  ;;  %632 = vpow2.f32 %v567_v8  ;;  %v415_v31 = vsub.f32 1.0, %v414_v25 }
 0x12b   :  { %v891_v62 = vmul.f32 %v246_v60, %v760_v29  ;;  %v568_v29 = vmul.f32 -1.442695, %v854_v33  ;;  %v387_v38 = vadd.f32 %v819_v10, %v386_v17  ;;  %v401_v40 = vmul.f32 %v873_v43, %v400_v19 }
 0x12c   :  { %v256_v1 = vsel %vm255_vm15, %v617_v15, %v252_v57  ;;  %vm403_vm5 = vweird.f32 %v808_v63  ;;  %vm404_vm6 = vweird.f32 %v873_v43  ;;  %v395_v45 = vor.u32 1.1754944e-38, %v394_v28 }
 0x12d   :  { %v261_v5 = vsel %vm258_vm0, %v260_v54, %v256_v1  ;;  %v460_v23 = vpack.c.bf16 %v891_v62, %v898_v4  ;;  %v913_v16 = vpop.eup %626  ;;  %634 = vpow2.f32 %v568_v29  ;;  %vm949_vm7 = vcmp.eq.f32.partialorder %v407_v30, 8.507059e+37  ;;  %vm961_vm8 = vmor %vm403_vm5, %vm404_vm6 }
 0x12e   :  { %v905_v11 = vmul.f32 %v261_v5, %v763_v32  ;;  %v909_v15 = vpop.f32.mrf.mxu0  ;;  %v429_v21 = vmul.f32 %v913_v16, %v875_v48  ;;  %v629_v24 = vpop.eup %628  ;;  %636 = vpow2.f32 %v569_v13  ;;  %v416_v56 = vmul.f32 %v895_v3, %v415_v31 }
 0x12f   :  { %v570_v22 = vmul.f32 -1.442695, %v909_v15  ;;  %v930_v34 = vadd.f32 1.0, %v629_v24  ;;  %v631_v36 = vpop.eup %630  ;;  %638 = vrcp.f32 %v920_v20  ;;  %v940_v49 = vpop.f32.mrf.mxu1  ;;  %v391_v52 = vsel %vm936_vm3, %v819_v10, %v387_v38 }
 0x130   :  { %v461_v32 = vpack.c.bf16 %v905_v11, %v902_v9  ;;  %v430_v46 = vsub.f32 1.0, %v429_v21  ;;  %v633_v37 = vpop.eup %632  ;;  %v954_v57 = vadd.f32 1.0, %v631_v36  ;;  %v402_v63 = vadd.f32 %v873_v43, %v401_v40 }
 0x131   :  { %640 = vpow2.f32 %v570_v22  ;;  %v410_v60 = vor.u32 1.1754944e-38, %v409_v42  ;;  %v571_v54 = vmul.f32 -1.442695, %v940_v49  ;;  %vm418_vm9 = vweird.f32 %v833_v18 }
 0x132   :  { %642 = vrcp.f32 %v930_v34  ;;  %vm419_vm10 = vweird.f32 %v895_v3  ;;  %v422_v1 = vand.u32 2147483647, %v833_v18  ;;  %v431_v5 = vmul.f32 %v913_v16, %v430_v46 }
 0x133   :  { %v635_v53 = vpop.eup %634  ;;  %v424_v10 = vand.u32 2147483648, %v833_v18  ;;  %vm433_vm11 = vweird.f32 %v875_v48  ;;  %vm434_vm12 = vweird.f32 %v913_v16  ;;  %v974_v29 = vadd.f32 1.0, %v633_v37  ;;  %vm991_vm13 = vmor %vm418_vm9, %vm419_vm10 }
 0x134   :  { %v637_v59 = vpop.eup %636  ;;  %v417_v13 = vadd.f32 %v895_v3, %v416_v56  ;;  %644 = vrcp.f32 %v954_v57  ;;  %v978_v25 = vadd.f32 1.0, %v635_v53  ;;  %v406_v21 = vsel %vm961_vm8, %v873_v43, %v402_v63  ;;  %vm1009_vm14 = vmor %vm433_vm11, %vm434_vm12 }
 0x135   :  { %v969_v8 = vpop.eup %638  ;;  %v980_v17 = vadd.f32 1.0, %v637_v59  ;;  %v437_v24 = vand.u32 2147483647, %v875_v48  ;;  %v439_v26 = vand.u32 2147483648, %v875_v48  ;;  %646 = vpow2.f32 %v571_v54 }
 0x136   :  { %v432_v28 = vadd.f32 %v913_v16, %v431_v5  ;;  %v264_v30 = vmul.f32 %v969_v8, %v920_v20  ;;  %648 = vrcp.f32 %v978_v25  ;;  %v396_v18 = vsel %vm942_vm4, %v395_v45, %v391_v52 }
 0x137   :  { %v641_v12 = vpop.eup %640  ;;  %v425_v31 = vor.u32 1.1754944e-38, %v424_v10  ;;  %650 = vrcp.f32 %v974_v29  ;;  %v421_v38 = vsel %vm991_vm13, %v895_v3, %v417_v13  ;;  %vm423_vm15 = vcmp.eq.f32.partialorder %v422_v1, 8.507059e+37 }
 0x138   :  { %v982_v19 = vpop.eup %642  ;;  %652 = vrcp.f32 %v980_v17  ;;  %v1018_v40 = vadd.f32 1.0, %v641_v12  ;;  %v411_v42 = vsel %vm949_vm7, %v410_v60, %v406_v21  ;;  %vm1022_vm0 = vcmp.eq.f32.partialorder %v437_v24, 8.507059e+37 }
 0x139   :  { %v294_v43 = vmul.f32 %v982_v19, %v930_v34  ;;  %v440_v44 = vor.u32 1.1754944e-38, %v439_v26  ;;  %v436_v37 = vsel %vm1009_vm14, %v913_v16, %v432_v28  ;;  %v265_v3 = vsub.f32 1.0, %v264_v30 }
 0x13a   :  { %v1026_v46 = vpop.eup %644  ;;  %v274_v47 = vand.u32 2147483648, %v920_v20  ;;  %v455_v56 = vmul.f32 %v396_v18, %v757_v27  ;;  %v426_v55 = vsel %vm423_vm15, %v425_v31, %v421_v38  ;;  %v1036_v52 = vmul.f32 %v411_v42, %v767_v35 }
 0x13b   :  { %v295_v53 = vsub.f32 1.0, %v294_v43  ;;  %v647_v45 = vpop.eup %646  ;;  %v272_v63 = vand.u32 2147483647, %v920_v20  ;;  %v304_v60 = vand.u32 2147483648, %v930_v34  ;;  %654 = vrcp.f32 %v1018_v40 }
 0x13c   :  { %v1033_v59 = vpop.eup %648  ;;  %v441_v54 = vsel %vm1022_vm0, %v440_v44, %v436_v37  ;;  %v279_v27 = vmul.f32 %v1026_v46, %v954_v57  ;;  %v302_v61 = vand.u32 2147483647, %v930_v34  ;;  %v457_v5 = vmul.f32 %v426_v55, %v775_v39 }
 0x13d   :  { %v1041_v16 = vpop.eup %650  ;;  %v324_v35 = vmul.f32 %v1033_v59, %v978_v25  ;;  %v266_v10 = vmul.f32 %v969_v8, %v265_v3  ;;  %vm268_vm1 = vweird.f32 %v920_v20  ;;  %v1055_v12 = vor.u32 1.1754944e-38, %v274_v47 }
 0x13e   :  { %v1050_v1 = vpop.eup %652  ;;  %v296_v13 = vmul.f32 %v982_v19, %v295_v53  ;;  %vm269_vm2 = vweird.f32 %v969_v8  ;;  %vm298_vm3 = vweird.f32 %v930_v34  ;;  %v458_v24 = vmul.f32 %v441_v54, %v790_v50 }
 0x13f   :  { %v325_v21 = vsub.f32 1.0, %v324_v35  ;;  %v339_v22 = vmul.f32 %v1050_v1, %v980_v17  ;;  %v305_v26 = vor.u32 1.1754944e-38, %v304_v60  ;;  %v317_v39 = vand.u32 2147483647, %v974_v29  ;;  %vm1113_vm13 = vmor %vm268_vm1, %vm269_vm2 }
 0x140   :  { %v319_v28 = vand.u32 2147483648, %v974_v29  ;;  %v280_v30 = vsub.f32 1.0, %v279_v27  ;;  %vm1065_vm4 = vcmp.eq.f32.partialorder %v302_v61, 8.507059e+37  ;;  %v309_v18 = vmul.f32 %v1041_v16, %v974_v29 }
 0x141   :  { %v326_v31 = vmul.f32 %v1033_v59, %v325_v21  ;;  %v1072_v36 = vadd.f32 1.0, %v647_v45  ;;  %v655_v38 = vpop.eup %654  ;;  %v267_v50 = vadd.f32 %v969_v8, %v266_v10  ;;  %v297_v42 = vadd.f32 %v982_v19, %v296_v13 }
 0x142   :  { %vm299_vm5 = vweird.f32 %v982_v19  ;;  %v466_v48 = vpack.c.bf16 %v457_v5, %v455_v56  ;;  %vm1077_vm6 = vcmp.eq.f32.partialorder %v272_v63, 8.507059e+37  ;;  %vm329_vm7 = vweird.f32 %v1033_v59 }
 0x143   :  { %v327_v37 = vadd.f32 %v1033_v59, %v326_v31  ;;  %v340_v3 = vsub.f32 1.0, %v339_v22  ;;  %v354_v47 = vmul.f32 %v655_v38, %v1018_v40  ;;  %vm328_vm8 = vweird.f32 %v978_v25  ;;  %vm1091_vm9 = vmor %vm298_vm3, %vm299_vm5 }
 0x144   :  { %v332_v53 = vand.u32 2147483647, %v978_v25  ;;  %v334_v45 = vand.u32 2147483648, %v978_v25  ;;  %656 = vrcp.f32 %v1072_v36  ;;  %476 = vmatpush.bf16.msrb.mxu2 %v466_v48  ;;  %v281_v56 = vmul.f32 %v1026_v46, %v280_v30  ;;  %vm1102_vm12 = vmor %vm328_vm8, %vm329_vm7 }
 0x145   :  { %v310_v63 = vsub.f32 1.0, %v309_v18  ;;  %vm343_vm10 = vweird.f32 %v980_v17  ;;  %v355_v60 = vsub.f32 1.0, %v354_v47  ;;  %vm284_vm11 = vweird.f32 %v1026_v46 }
 0x146   :  { %v301_v25 = vsel %vm1091_vm9, %v982_v19, %v297_v42  ;;  %v362_v34 = vand.u32 2147483647, %v1018_v40  ;;  %v364_v27 = vand.u32 2147483648, %v1018_v40  ;;  %v467_v61 = vpack.c.bf16 %v458_v24, %v1036_v52 }
 0x147   :  { %vm313_vm14 = vweird.f32 %v974_v29  ;;  %v331_v19 = vsel %vm1102_vm12, %v1033_v59, %v327_v37  ;;  %v341_v5 = vmul.f32 %v1050_v1, %v340_v3  ;;  %v356_v10 = vmul.f32 %v655_v38, %v355_v60 }
 0x148   :  { %vm359_vm15 = vweird.f32 %v655_v38  ;;  %v271_v52 = vsel %vm1113_vm13, %v969_v8, %v267_v50  ;;  %vm283_vm0 = vweird.f32 %v954_v57  ;;  %vm314_vm1 = vweird.f32 %v1041_v16  ;;  %489 = vmatpush.bf16.msrb.mxu3 %v467_v61 }
 0x149   :  { %v335_v20 = vor.u32 1.1754944e-38, %v334_v45  ;;  %v311_v13 = vmul.f32 %v1041_v16, %v310_v63  ;;  %vm333_vm2 = vcmp.eq.f32.partialorder %v332_v53, 8.507059e+37  ;;  %v357_v21 = vadd.f32 %v655_v38, %v356_v10  ;;  %vm1166_vm9 = vmor %vm313_vm14, %vm314_vm1 }
 0x14a   :  { %vm358_vm3 = vweird.f32 %v1018_v40  ;;  %v686_v59 = vmov 2   ;;  %v657_v22 = vpop.eup %656  ;;  %v306_v24 = vsel %vm1065_vm4, %v305_v26, %v301_v25  ;;  %vm344_vm5 = vweird.f32 %v1050_v1 }
 0x14b   :  { %592 = vset.pattern.permute.xlu1 %v686_v59  ;;  %593 = vset.pattern.permute.xlu0 %v686_v59  ;;  %v336_v8 = vsel %vm333_vm2, %v335_v20, %v331_v19  ;;  %vm360_vm7 = vmor %vm358_vm3, %vm359_vm15  ;;  %v365_v30 = vor.u32 1.1754944e-38, %v364_v27  ;;  %v342_v18 = vadd.f32 %v1050_v1, %v341_v5  ;;  %vm363_vm8 = vcmp.eq.f32.partialorder %v362_v34, 8.507059e+37 }
 0x14c   :  { %503 = vperm.xlu1 %592, %v711_v0   ;;  %v361_v31 = vsel %vm360_vm7, %v655_v38, %v357_v21  ;;  %v369_v40 = vmul.f32 %v657_v22, %v1072_v36  ;;  %v276_v50 = vsel %vm1077_vm6, %v1055_v12, %v271_v52  ;;  %v347_v26 = vand.u32 2147483647, %v980_v17  ;;  %vm1150_vm4 = vmor %vm343_vm10, %vm344_vm5 }
 0x14d   :  { %v349_v43 = vand.u32 2147483648, %v980_v17  ;;  %v366_v42 = vsel %vm363_vm8, %v365_v30, %v361_v31  ;;  %v312_v48 = vadd.f32 %v1041_v16, %v311_v13  ;;  %v451_v37 = vmul.f32 %v336_v8, %v854_v33  ;;  %vm1174_vm10 = vmor %vm283_vm0, %vm284_vm11 }
 0x14e   :  { %v453_v0 = vmul.f32 %v366_v42, %v909_v15  ;;  %v370_v3 = vsub.f32 1.0, %v369_v40  ;;  %v282_v38 = vadd.f32 %v1026_v46, %v281_v56  ;;  %v449_v47 = vmul.f32 %v306_v24, %v801_v58 }
 0x14f   :  { %v377_v44 = vand.u32 2147483647, %v1072_v36  ;;  %v379_v53 = vand.u32 2147483648, %v1072_v36  ;;  %v346_v33 = vsel %vm1150_vm4, %v1050_v1, %v342_v18  ;;  %vm374_vm6 = vweird.f32 %v657_v22 }
 0x150   :  { %v371_v15 = vmul.f32 %v657_v22, %v370_v3  ;;  %v464_v45 = vpack.c.bf16 %v453_v0, %v451_v37  ;;  %v447_v58 = vmul.f32 %v276_v50, %v777_v41  ;;  %v287_v56 = vand.u32 2147483647, %v954_v57 }
 0x151   :  { %v289_v17 = vand.u32 2147483648, %v954_v57  ;;  %v350_v63 = vor.u32 1.1754944e-38, %v349_v43  ;;  %v316_v41 = vsel %vm1166_vm9, %v1041_v16, %v312_v48  ;;  %vm348_vm12 = vcmp.eq.f32.partialorder %v347_v26, 8.507059e+37 }
 0x152   :  { %v372_v60 = vadd.f32 %v657_v22, %v371_v15  ;;  %vm373_vm13 = vweird.f32 %v1072_v36  ;;  %477 = vmatpush.bf16.msrb.mxu2 %v464_v45  ;;  %vm318_vm14 = vcmp.eq.f32.partialorder %v317_v39, 8.507059e+37  ;;  %v320_v25 = vor.u32 1.1754944e-38, %v319_v28 }
 0x153   :  { %v351_v57 = vsel %vm348_vm12, %v350_v63, %v346_v33  ;;  %vm375_vm11 = vmor %vm373_vm13, %vm374_vm6  ;;  %v380_v54 = vor.u32 1.1754944e-38, %v379_v53  ;;  %v286_v34 = vsel %vm1174_vm10, %v1026_v46, %v282_v38  ;;  %vm378_vm15 = vcmp.eq.f32.partialorder %v377_v44, 8.507059e+37  ;;  %v459_v46 = vld [vmem:[%s1210_s2] sm:$0xf] }
 0x154   :  { %v376_v16 = vsel %vm375_vm11, %v657_v22, %v372_v60  ;;  %v462_v27 = vpack.c.bf16 %v449_v47, %v447_v58  ;;  %v290_v61 = vor.u32 1.1754944e-38, %v289_v17  ;;  %v321_v36 = vsel %vm318_vm14, %v320_v25, %v316_v41 }
 0x155   :  { %v381_v35 = vsel %vm378_vm15, %v380_v54, %v376_v16  ;;  %vm288_vm0 = vcmp.eq.f32.partialorder %v287_v56, 8.507059e+37  ;;  %v452_v39 = vmul.f32 %v351_v57, %v893_v2  ;;  %v450_v19 = vmul.f32 %v321_v36, %v829_v14 }
 0x156   :  { %v454_v29 = vmul.f32 %v381_v35, %v940_v49  ;;  %478 = vmatpush.bf16.msrb.mxu2 %v462_v27  ;;  %v291_v28 = vsel %vm288_vm0, %v290_v61, %v286_v34  ;;  %vm468_vm1 = vcmask 523264  }
 0x157   :  { %v448_v10 = vmul.f32 %v291_v28, %v792_v51 }
 0x158   :  { %v465_v5 = vpack.c.bf16 %v454_v29, %v452_v39 }
 0x159   :  { %v463_v2 = vpack.c.bf16 %v450_v19, %v448_v10 }
 0x15a   :  { %490 = vmatpush.bf16.msrb.mxu3 %v465_v5  ;;  %479 = vmatpush.bf16.msrb.mxu2 %v460_v23 }
 0x15d   :  { %576 = vmatmul.msk.bf16.vlgmr.msrb.gmra.mxu2 %vm468_vm1, %v459_v46 }
 0x15e   :  { %491 = vmatpush.bf16.msrb.mxu3 %v463_v2 }
 0x162   :  { %492 = vmatpush.bf16.msrb.mxu3 %v461_v32 }
 0x165   :  { %577 = vmatmul.msk.bf16.vlgmr.msrb.gmra.mxu3 %vm468_vm1, %v459_v46 }
 0x1be   :  { %v504_v52 = vpop.permute.xlu1 %503 }
 0x1e0   :  { %v481_v14 = vpop.f32.mrf.mxu2 }
 0x1e1   :  { %v498_v51 = vsub.f32 %v481_v14, %v724_v6 }
 0x1e3   :  { %v500_v49 = vmul.f32 %v498_v51, %v498_v51 }
 0x1e5   :  { %v506_v13 = vmul.f32 %v504_v52, %v500_v49 }
 0x1e8   :  { %v494_v62 = vpop.f32.mrf.mxu3  ;;  %v483_v4 = vpop.f32.mrf.mxu2 }
 0x1e9   :  { %v499_v23 = vsub.f32 %v494_v62, %v729_v7 }
 0x1eb   :  { %v501_v20 = vmul.f32 %v499_v23, %v499_v23 }
 0x1ed   :  { %v507_v21 = vmul.f32 %v504_v52, %v501_v20 }
 0x1ef   :  { %v508_v59 = vadd.f32 %v507_v21, %v506_v13 }
 0x1f0   :  { %v496_v22 = vpop.f32.mrf.mxu3 }
 0x1f1   :  { %509 = vadd.xlane.f32.xlu1 %v508_v59 }
 0x264   :  { %v510_v24 = vpop.xlane.xlu1 %509 }
 0x265   :  { %v511_v8 = vrot.slane %v510_v24, 4 }
 0x267   :  { %v512_v9 = vadd.f32 %v511_v8, %v510_v24 }
 0x269   :  { %v513_v11 = vrot.slane %v512_v9, 2 }
 0x26b   :  { %v514_v32 = vadd.f32 %v513_v11, %v512_v9 }
 0x26d   :  { %v515_v30 = vrot.slane %v514_v32, 1 }
 0x26f   :  { %v516_v18 = vadd.f32 %v515_v30, %v514_v32 }
 0x271   :  { %584 = vpush %v516_v18 }
 0x2a2   :  { %s585_s11 = spop %584 }
 0x2a3   :  { %v518_v6 = vstv %s585_s11 }
 0x2a4   :  { %519 = vst [vmem:[#allocation2] sm:$0x1] %v518_v6 }
 0x2a5   :  { %530 = dma.vmem_to_hbm [thread:$0]  %s526_s10, 16, %s528_s8, [#allocation3]  }
 0x2a6   :  { %682 = dma.done.wait [#allocation3], 16  }
 0x2a7   :  { %683 = vsyncadd [#allocation3], 4294967280 }
 0x2a8   :  { %535 = vsyncpa [#allocation3], 1 }

</bundles_post_ra>
